<compile_context>
chip_gen: v5e
topology: v5e:2x2
jax: 0.10.0
libtpu: 0.0.40
codegen_flags: <defaults>
</compile_context>

<pallas_src>
import jax
import jax.numpy as jnp
from jax.experimental import pallas as pl
from jax.experimental.pallas import tpu as pltpu

H = 512  # hidden width fixed by the module definition

# rows of the packed small-parameter slab
_ROW_W1, _ROW_B1, _ROW_B2, _ROW_W3 = 0, 1, 2, 3


def _mlp_kernel(x_ref, b3_ref, slab_ref, w2_ref, o_ref):
    # x_ref, b3_ref : SMEM (1,) f32 scalars
    # slab_ref      : VMEM (8, H) f32, rows = [w1, b1, b2, w3, 0, 0, 0, 0]
    # w2_ref        : VMEM (H, H) bf16 (fc2.weight.T)
    # o_ref         : VMEM (1, 1) f32
    x = x_ref[0]

    w1 = slab_ref[_ROW_W1:_ROW_W1 + 1, :]     # (1, H)
    b1 = slab_ref[_ROW_B1:_ROW_B1 + 1, :]     # (1, H)
    b2 = slab_ref[_ROW_B2:_ROW_B2 + 1, :]     # (1, H)
    w3 = slab_ref[_ROW_W3:_ROW_W3 + 1, :]     # (1, H)

    # fc1: Linear(1, 512) -> relu     (VPU, f32)
    h1 = jnp.maximum(x * w1 + b1, 0.0)                           # (1, H)

    # fc2: Linear(512, 512) -> relu   (bf16 MXU operands, f32 accumulate)
    h2 = jnp.dot(h1.astype(jnp.bfloat16), w2_ref[...],
                 preferred_element_type=jnp.float32)             # (1, H)
    h2 = jnp.maximum(h2 + b2, 0.0)

    # fc3: Linear(512, 1)             (VPU mult + lane reduce, f32)
    z = jnp.sum(h2 * w3, axis=-1, keepdims=True) + b3_ref[0]     # (1, 1)

    # 10 * sigmoid(z)                 (EUP transcendental, f32)
    o_ref[...] = 10.0 * jax.nn.sigmoid(z)


def random_stars_forward(x_scalar, params):
    """x_scalar: f32 array of shape (1,).  Returns f32 array of shape (1,)."""
    slab, w2_bf16, b3 = params

    out = pl.pallas_call(
        _mlp_kernel,
        out_shape=jax.ShapeDtypeStruct((1, 1), jnp.float32),
        in_specs=[
            pl.BlockSpec(memory_space=pltpu.SMEM),   # x   (scalar path)
            pl.BlockSpec(memory_space=pltpu.SMEM),   # b3  (scalar path)
            pl.BlockSpec(memory_space=pltpu.VMEM),   # packed small params
            pl.BlockSpec(memory_space=pltpu.VMEM),   # W2 (bf16, 512 KiB)
        ],
        out_specs=pl.BlockSpec(memory_space=pltpu.VMEM),
    )(x_scalar, b3, slab, w2_bf16)
    return out.reshape(1)


def init_params(key):
    """Deterministic synthetic parameters with the module's shapes."""
    k1, k2, k3, k4, k5, k6 = jax.random.split(key, 6)
    # fc1: Linear(1, 512)   torch weight (512, 1) -> stored as a (H,) row
    w1 = jax.random.normal(k1, (H,), jnp.float32) * 0.5
    b1 = jax.random.normal(k2, (H,), jnp.float32) * 0.1
    # fc2: Linear(512, 512) torch weight (512, 512) -> stored transposed, bf16
    w2 = jax.random.normal(k3, (H, H), jnp.float32) * (1.0 / jnp.sqrt(H))
    b2 = jax.random.normal(k4, (H,), jnp.float32) * 0.1
    # fc3: Linear(512, 1)   torch weight (1, 512) -> stored as a (H,) row
    w3 = jax.random.normal(k5, (H,), jnp.float32) * (1.0 / jnp.sqrt(H))
    b3 = jax.random.normal(k6, (1,), jnp.float32) * 0.1

    # Pack the four small vectors into one sublane-aligned (8, H) slab.
    slab = jnp.zeros((8, H), jnp.float32)
    slab = (slab.at[_ROW_W1].set(w1)
                .at[_ROW_B1].set(b1)
                .at[_ROW_B2].set(b2)
                .at[_ROW_W3].set(w3))

    return (slab, w2.astype(jnp.bfloat16), b3)


if __name__ == "__main__":
    key = jax.random.PRNGKey(0)
    pkey, xkey = jax.random.split(key)

    params = init_params(pkey)

    # user_id / song_id are ignored by the PyTorch forward (kept for parity).
    user_id = jnp.array([3], dtype=jnp.int32)
    song_id = jnp.array([7], dtype=jnp.int32)
    del user_id, song_id  # unused, exactly as in the reference forward

    # torch.randint(0, 10, (1,)) -> float32, drawn deterministically host-side.
    x = jax.random.randint(xkey, (1,), 0, 10).astype(jnp.float32)

    y = random_stars_forward(x, params)
    y = jax.block_until_ready(y)

    assert y.shape == (1,)
    assert bool(jnp.all((y >= 0.0) & (y <= 10.0)))

    print("KERNEL_OK")
</pallas_src>

<mosaic_0001>
module attributes {stable_mosaic.version = 11 : i64} {
  func.func @_mlp_kernel(%arg0: memref<1xf32, #tpu.memory_space<smem>>, %arg1: memref<1xf32, #tpu.memory_space<smem>>, %arg2: memref<8x512xf32, #tpu.memory_space<vmem>>, %arg3: memref<512x512xbf16, #tpu.memory_space<vmem>>, %arg4: memref<1x1xf32, #tpu.memory_space<vmem>>) attributes {dimension_semantics = [], scalar_prefetch = 0 : i64, scratch_operands = 0 : i64, tpu.core_type = #tpu.core_type<tc>} {
    %c0 = arith.constant 0 : index
    %0 = memref.load %arg0[%c0] : memref<1xf32, #tpu.memory_space<smem>>
    %c0_0 = arith.constant 0 : index
    %c0_1 = arith.constant 0 : index
    %1 = vector.load %arg2[%c0_0, %c0_1] : memref<8x512xf32, #tpu.memory_space<vmem>>, vector<1x512xf32>
    %c1 = arith.constant 1 : index
    %c0_2 = arith.constant 0 : index
    %2 = vector.load %arg2[%c1, %c0_2] : memref<8x512xf32, #tpu.memory_space<vmem>>, vector<1x512xf32>
    %c2 = arith.constant 2 : index
    %c0_3 = arith.constant 0 : index
    %3 = vector.load %arg2[%c2, %c0_3] : memref<8x512xf32, #tpu.memory_space<vmem>>, vector<1x512xf32>
    %c3 = arith.constant 3 : index
    %c0_4 = arith.constant 0 : index
    %4 = vector.load %arg2[%c3, %c0_4] : memref<8x512xf32, #tpu.memory_space<vmem>>, vector<1x512xf32>
    %5 = vector.broadcast %0 : f32 to vector<1x512xf32>
    %6 = arith.mulf %5, %1 : vector<1x512xf32>
    %7 = arith.addf %6, %2 : vector<1x512xf32>
    %cst = arith.constant 0.000000e+00 : f32
    %8 = vector.broadcast %cst : f32 to vector<1x512xf32>
    %9 = arith.maximumf %7, %8 : vector<1x512xf32>
    %10 = arith.truncf %9 : vector<1x512xf32> to vector<1x512xbf16>
    %c0_5 = arith.constant 0 : index
    %c0_6 = arith.constant 0 : index
    %11 = vector.load %arg3[%c0_5, %c0_6] : memref<512x512xbf16, #tpu.memory_space<vmem>>, vector<512x512xbf16>
    %cst_7 = arith.constant dense<0.000000e+00> : vector<1x512xf32>
    %12 = tpu.matmul %10, %11, %cst_7 {dimension_numbers = #tpu.dot_dimension_numbers<[1], [0], [0], [1], [0, 0, 1, 1], [], []>} : vector<1x512xbf16>, vector<512x512xbf16>, vector<1x512xf32> -> vector<1x512xf32>
    %13 = arith.addf %12, %3 : vector<1x512xf32>
    %cst_8 = arith.constant 0.000000e+00 : f32
    %14 = vector.broadcast %cst_8 : f32 to vector<1x512xf32>
    %15 = arith.maximumf %13, %14 : vector<1x512xf32>
    %16 = arith.mulf %15, %4 : vector<1x512xf32>
    %cst_9 = arith.constant dense<0.000000e+00> : vector<1xf32>
    %17 = vector.multi_reduction <add>, %16, %cst_9 [1] : vector<1x512xf32> to vector<1xf32>
    %18 = vector.shape_cast %17 : vector<1xf32> to vector<1x1xf32>
    %c0_10 = arith.constant 0 : index
    %19 = memref.load %arg1[%c0_10] : memref<1xf32, #tpu.memory_space<smem>>
    %20 = vector.broadcast %19 : f32 to vector<1x1xf32>
    %21 = arith.addf %18, %20 : vector<1x1xf32>
    %22 = arith.negf %21 : vector<1x1xf32>
    %23 = math.exp %22 : vector<1x1xf32>
    %cst_11 = arith.constant 1.000000e+00 : f32
    %24 = vector.broadcast %cst_11 : f32 to vector<1x1xf32>
    %25 = arith.addf %24, %23 : vector<1x1xf32>
    %26 = arith.divf %24, %25 : vector<1x1xf32>
    %cst_12 = arith.constant 1.000000e+01 : f32
    %27 = vector.broadcast %cst_12 : f32 to vector<1x1xf32>
    %28 = arith.mulf %27, %26 : vector<1x1xf32>
    %c0_13 = arith.constant 0 : index
    %c0_14 = arith.constant 0 : index
    %29 = vector.load %arg4[%c0_13, %c0_14] : memref<1x1xf32, #tpu.memory_space<vmem>>, vector<1x1xf32>
    tpu.vector_store %arg4[%c0_13, %c0_14], %28 {strides = array<i32>} : memref<1x1xf32, #tpu.memory_space<vmem>>, vector<1x1xf32>,
    return
  }
}

</mosaic_0001>

<bundles_post_ra>
// kernel: tpu_custom_call.1
= control target key start
LH: loop header
LB: loop body
LE: loop exit
PB: predicated region body
PF: predicated region fallthrough
CT: control target
= control target key end

     0   :  { %11 = vsyncpa [#allocation5], 0  ;;  %s1927_s0 = inlined_call_operand.<no memory space> [shape: f32[1], index: 0, kind: input, shape index: {}]   ;;  %s1928_s1 = inlined_call_operand.<no memory space> [shape: f32[1], index: 1, kind: input, shape index: {}]   ;;  %s1929_s2 = inlined_call_operand.hbm [shape: f32[8,512], index: 2, kind: input, shape index: {}]   ;;  %s1930_s3 = inlined_call_operand.hbm [shape: bf16[512,512], index: 3, kind: input, shape index: {}]   ;;  %s1931_s4 = inlined_call_operand.hbm [shape: f32[1,1], index: 4, kind: output, shape index: {}]  }
   0x1   :  { %12 = vsyncpa [#allocation8], 0 }
   0x2   :  { %13 = vsyncpa [#allocation6], 0  ;;  %s23_s17 = sshll.u32 %s1929_s2, 4  ;;  %s1858_s18 = smov [#allocation4]   ;;  %s24_s17 = int_to_ptr.hbm [resolvable:$true] %s23_s17 }
   0x3   :  { %s25_s19 = sshll.u32 %s1858_s18, 4  ;;  %s33_s22 = sshll.u32 %s1930_s3, 4  ;;  %s26_s19 = int_to_ptr.vmem [resolvable:$true] %s25_s19  ;;  %s34_s22 = int_to_ptr.hbm [resolvable:$true] %s33_s22 }
   0x4   :  { %28 = dma.hbm_to_vmem [thread:$0]  %s24_s17, 512, %s26_s19, [#allocation5]  }
   0x5   :  { %s1859_s23 = smov [#allocation7]   ;;  %s1860_s25 = smov 256  }
   0x6   :  { %s35_s24 = sshll.u32 %s1859_s23, 4  ;;  %s1861_s26 = smov 16   ;;  %s36_s24 = int_to_ptr.vmem [resolvable:$true] %s35_s24 }
   0x7   :  { %41 = dma.hbm_to_vmem [thread:$0]  %s34_s22, 16384, %s36_s24, [#allocation8], %s1860_s25, %s1860_s25, %s1861_s26  }
   0x8   :  { %1852 = dma.done.wait [#allocation5], 512  }
   0x9   :  { %1853 = vsyncadd [#allocation5], 4294966784 }
   0xa   :  { %1854 = dma.done.wait [#allocation8], 16384  }
   0xb   :  { %1855 = vsyncadd [#allocation8], 4294950912  ;;  %v1244_v0 = vld [vmem:[#allocation7 + $0xe0] sm:$0xf]  ;;  %v1673_v1 = vld [vmem:[#allocation7 + $0xec] sm:$0xf0] }
   0xc   :  { %v1372_v2 = vld [vmem:[#allocation7 + $0x1e0] sm:$0xf]  ;;  %v1245_v3 = vor.u32 %v1673_v1, %v1244_v0  ;;  %v1705_v4 = vld [vmem:[#allocation7 + $0x1ec] sm:$0xf0]  ;;  %vm1077_vm0 = vcmask 1040384   ;;  %s1862_s28 = smov [#allocation9]  }
   0xd   :  { %v1500_v5 = vld [vmem:[#allocation7 + $0x2e0] sm:$0xf]  ;;  %v1737_v6 = vld [vmem:[#allocation7 + $0x2ec] sm:$0xf0]  ;;  %v1373_v7 = vor.u32 %v1705_v4, %v1372_v2  ;;  %s1119_s5 = sshll.u32 %s1931_s4, 4  ;;  %vm1110_vm5 = vcmask 0   ;;  %s1120_s5 = int_to_ptr.hbm [resolvable:$true] %s1119_s5 }
   0xe   :  { %v1501_v8 = vor.u32 %v1737_v6, %v1500_v5  ;;  %v1628_v9 = vld [vmem:[#allocation7 + $0x3e0] sm:$0xf]  ;;  %v1769_v10 = vld [vmem:[#allocation7 + $0x3ec] sm:$0xf0]  ;;  %852 = vmatpush.bf16.msra.mxu0 %v1245_v3 }
   0xf   :  { %v1228_v11 = vld [vmem:[#allocation7 + $0xc0] sm:$0xf]  ;;  %v1629_v12 = vor.u32 %v1769_v10, %v1628_v9  ;;  %v1669_v13 = vld [vmem:[#allocation7 + $0xcc] sm:$0xf0]  ;;  %865 = vmatpush.bf16.msra.mxu1 %v1373_v7 }
  0x10   :  { %v1356_v14 = vld [vmem:[#allocation7 + $0x1c0] sm:$0xf]  ;;  %v1701_v15 = vld [vmem:[#allocation7 + $0x1cc] sm:$0xf0]  ;;  %878 = vmatpush.bf16.msra.mxu2 %v1501_v8  ;;  %v1229_v16 = vor.u32 %v1669_v13, %v1228_v11 }
  0x11   :  { %v1357_v17 = vor.u32 %v1701_v15, %v1356_v14  ;;  %v1484_v18 = vld [vmem:[#allocation7 + $0x2c0] sm:$0xf]  ;;  %v1733_v19 = vld [vmem:[#allocation7 + $0x2cc] sm:$0xf0]  ;;  %891 = vmatpush.bf16.msra.mxu3 %v1629_v12 }
  0x12   :  { %v1612_v20 = vld [vmem:[#allocation7 + $0x3c0] sm:$0xf]  ;;  %v1485_v21 = vor.u32 %v1733_v19, %v1484_v18  ;;  %v1765_v22 = vld [vmem:[#allocation7 + $0x3cc] sm:$0xf0]  ;;  %853 = vmatpush.bf16.msra.mxu0 %v1229_v16 }
  0x13   :  { %v1212_v23 = vld [vmem:[#allocation7 + $0xa0] sm:$0xf]  ;;  %v1665_v24 = vld [vmem:[#allocation7 + $0xac] sm:$0xf0]  ;;  %v1613_v25 = vor.u32 %v1765_v22, %v1612_v20  ;;  %866 = vmatpush.bf16.msra.mxu1 %v1357_v17 }
  0x14   :  { %v1340_v26 = vld [vmem:[#allocation7 + $0x1a0] sm:$0xf]  ;;  %v1697_v27 = vld [vmem:[#allocation7 + $0x1ac] sm:$0xf0]  ;;  %v1213_v29 = vor.u32 %v1665_v24, %v1212_v23  ;;  %879 = vmatpush.bf16.msra.mxu2 %v1485_v21 }
  0x15   :  { %v1468_v28 = vld [vmem:[#allocation7 + $0x2a0] sm:$0xf]  ;;  %v1729_v30 = vld [vmem:[#allocation7 + $0x2ac] sm:$0xf0]  ;;  %v1341_v33 = vor.u32 %v1697_v27, %v1340_v26  ;;  %892 = vmatpush.bf16.msra.mxu3 %v1613_v25 }
  0x16   :  { %v1596_v31 = vld [vmem:[#allocation7 + $0x3a0] sm:$0xf]  ;;  %v1761_v32 = vld [vmem:[#allocation7 + $0x3ac] sm:$0xf0]  ;;  %v1469_v34 = vor.u32 %v1729_v30, %v1468_v28  ;;  %854 = vmatpush.bf16.msra.mxu0 %v1213_v29  ;;  %v1671_v28 = vld [vmem:[#allocation7 + $0xe4] sm:$0xf] }
  0x17   :  { %v1196_v35 = vld [vmem:[#allocation7 + $0x80] sm:$0xf]  ;;  %v1661_v36 = vld [vmem:[#allocation7 + $0x8c] sm:$0xf0]  ;;  %v1597_v38 = vor.u32 %v1761_v32, %v1596_v31  ;;  %867 = vmatpush.bf16.msra.mxu1 %v1341_v33  ;;  %v1246_v29 = vld [vmem:[#allocation7 + $0xf0] sm:$0xf0] }
  0x18   :  { %v1324_v37 = vld [vmem:[#allocation7 + $0x180] sm:$0xf]  ;;  %v1693_v39 = vld [vmem:[#allocation7 + $0x18c] sm:$0xf0]  ;;  %v1197_v44 = vor.u32 %v1661_v36, %v1196_v35  ;;  %880 = vmatpush.bf16.msra.mxu2 %v1469_v34  ;;  %v1703_v30 = vld [vmem:[#allocation7 + $0x1e4] sm:$0xf] }
  0x19   :  { %v1452_v40 = vld [vmem:[#allocation7 + $0x280] sm:$0xf]  ;;  %v1725_v41 = vld [vmem:[#allocation7 + $0x28c] sm:$0xf0]  ;;  %v1325_v45 = vor.u32 %v1693_v39, %v1324_v37  ;;  %893 = vmatpush.bf16.msra.mxu3 %v1597_v38  ;;  %v1374_v32 = vld [vmem:[#allocation7 + $0x1f0] sm:$0xf0] }
  0x1a   :  { %v1580_v42 = vld [vmem:[#allocation7 + $0x380] sm:$0xf]  ;;  %v1757_v43 = vld [vmem:[#allocation7 + $0x38c] sm:$0xf0]  ;;  %v1453_v46 = vor.u32 %v1725_v41, %v1452_v40  ;;  %855 = vmatpush.bf16.msra.mxu0 %v1197_v44  ;;  %v1735_v33 = vld [vmem:[#allocation7 + $0x2e4] sm:$0xf]  ;;  %v1249_v40 = vor.u32 %v1671_v28, %v1246_v29 }
  0x1b   :  { %v1180_v47 = vld [vmem:[#allocation7 + $0x60] sm:$0xf]  ;;  %v1657_v48 = vld [vmem:[#allocation7 + $0x6c] sm:$0xf0]  ;;  %v1581_v50 = vor.u32 %v1757_v43, %v1580_v42  ;;  %868 = vmatpush.bf16.msra.mxu1 %v1325_v45  ;;  %v1502_v34 = vld [vmem:[#allocation7 + $0x2f0] sm:$0xf0]  ;;  %v1377_v43 = vor.u32 %v1703_v30, %v1374_v32 }
  0x1c   :  { %v1308_v49 = vld [vmem:[#allocation7 + $0x160] sm:$0xf]  ;;  %v1689_v51 = vld [vmem:[#allocation7 + $0x16c] sm:$0xf0]  ;;  %v1181_v56 = vor.u32 %v1657_v48, %v1180_v47  ;;  %881 = vmatpush.bf16.msra.mxu2 %v1453_v46  ;;  %v1767_v37 = vld [vmem:[#allocation7 + $0x3e4] sm:$0xf]  ;;  %v1505_v44 = vor.u32 %v1735_v33, %v1502_v34  ;;  %v58_v48 = vstv %s1927_s0 }
  0x1d   :  { %v1436_v52 = vld [vmem:[#allocation7 + $0x260] sm:$0xf]  ;;  %v1721_v53 = vld [vmem:[#allocation7 + $0x26c] sm:$0xf0]  ;;  %v1309_v57 = vor.u32 %v1689_v51, %v1308_v49  ;;  %894 = vmatpush.bf16.msra.mxu3 %v1581_v50  ;;  %v1630_v38 = vld [vmem:[#allocation7 + $0x3f0] sm:$0xf0] }
  0x1e   :  { %v1564_v54 = vld [vmem:[#allocation7 + $0x360] sm:$0xf]  ;;  %v1753_v55 = vld [vmem:[#allocation7 + $0x36c] sm:$0xf0]  ;;  %v1437_v58 = vor.u32 %v1721_v53, %v1436_v52  ;;  %856 = vmatpush.bf16.msra.mxu0 %v1181_v56  ;;  %v1667_v41 = vld [vmem:[#allocation7 + $0xc4] sm:$0xf]  ;;  %v1633_v49 = vor.u32 %v1767_v37, %v1630_v38 }
  0x1f   :  { %v1164_v59 = vld [vmem:[#allocation7 + $0x40] sm:$0xf]  ;;  %v1653_v60 = vld [vmem:[#allocation7 + $0x4c] sm:$0xf0]  ;;  %v1565_v62 = vor.u32 %v1753_v55, %v1564_v54  ;;  %869 = vmatpush.bf16.msra.mxu1 %v1309_v57  ;;  %v1230_v42 = vld [vmem:[#allocation7 + $0xd0] sm:$0xf0] }
  0x20   :  { %v1292_v61 = vld [vmem:[#allocation7 + $0x140] sm:$0xf]  ;;  %v1685_v63 = vld [vmem:[#allocation7 + $0x14c] sm:$0xf0]  ;;  %v1165_v4 = vor.u32 %v1653_v60, %v1164_v59  ;;  %882 = vmatpush.bf16.msra.mxu2 %v1437_v58  ;;  %v1699_v45 = vld [vmem:[#allocation7 + $0x1c4] sm:$0xf]  ;;  %v1233_v55 = vor.u32 %v1667_v41, %v1230_v42 }
  0x21   :  { %v1420_v0 = vld [vmem:[#allocation7 + $0x240] sm:$0xf]  ;;  %v1717_v1 = vld [vmem:[#allocation7 + $0x24c] sm:$0xf0]  ;;  %v1293_v5 = vor.u32 %v1685_v63, %v1292_v61  ;;  %895 = vmatpush.bf16.msra.mxu3 %v1565_v62  ;;  %v1358_v46 = vld [vmem:[#allocation7 + $0x1d0] sm:$0xf0] }
  0x22   :  { %v1548_v2 = vld [vmem:[#allocation7 + $0x340] sm:$0xf]  ;;  %v1749_v3 = vld [vmem:[#allocation7 + $0x34c] sm:$0xf0]  ;;  %v1421_v6 = vor.u32 %v1717_v1, %v1420_v0  ;;  %857 = vmatpush.bf16.msra.mxu0 %v1165_v4  ;;  %v1731_v47 = vld [vmem:[#allocation7 + $0x2c4] sm:$0xf]  ;;  %v1361_v59 = vor.u32 %v1699_v45, %v1358_v46 }
  0x23   :  { %v1148_v7 = vld [vmem:[#allocation7 + $0x20] sm:$0xf]  ;;  %v1649_v8 = vld [vmem:[#allocation7 + $0x2c] sm:$0xf0]  ;;  %v1549_v10 = vor.u32 %v1749_v3, %v1548_v2  ;;  %870 = vmatpush.bf16.msra.mxu1 %v1293_v5  ;;  %v1486_v50 = vld [vmem:[#allocation7 + $0x2d0] sm:$0xf0] }
  0x24   :  { %v1276_v9 = vld [vmem:[#allocation7 + $0x120] sm:$0xf]  ;;  %v1681_v11 = vld [vmem:[#allocation7 + $0x12c] sm:$0xf0]  ;;  %v1149_v16 = vor.u32 %v1649_v8, %v1148_v7  ;;  %883 = vmatpush.bf16.msra.mxu2 %v1421_v6  ;;  %v1763_v51 = vld [vmem:[#allocation7 + $0x3c4] sm:$0xf]  ;;  %v1489_v60 = vor.u32 %v1731_v47, %v1486_v50 }
  0x25   :  { %v1404_v12 = vld [vmem:[#allocation7 + $0x220] sm:$0xf]  ;;  %v1713_v13 = vld [vmem:[#allocation7 + $0x22c] sm:$0xf0]  ;;  %v1277_v19 = vor.u32 %v1681_v11, %v1276_v9  ;;  %896 = vmatpush.bf16.msra.mxu3 %v1549_v10  ;;  %v1614_v52 = vld [vmem:[#allocation7 + $0x3d0] sm:$0xf0] }
  0x26   :  { %v1532_v14 = vld [vmem:[#allocation7 + $0x320] sm:$0xf]  ;;  %v1745_v15 = vld [vmem:[#allocation7 + $0x32c] sm:$0xf0]  ;;  %v1405_v20 = vor.u32 %v1713_v13, %v1404_v12  ;;  %858 = vmatpush.bf16.msra.mxu0 %v1149_v16  ;;  %v1663_v56 = vld [vmem:[#allocation7 + $0xa4] sm:$0xf]  ;;  %v1617_v0 = vor.u32 %v1763_v51, %v1614_v52 }
  0x27   :  { %v1132_v17 = vld [vmem:[#allocation7] sm:$0xf]  ;;  %v1645_v18 = vld [vmem:[#allocation7 + $0xc] sm:$0xf0]  ;;  %v1533_v24 = vor.u32 %v1745_v15, %v1532_v14  ;;  %871 = vmatpush.bf16.msra.mxu1 %v1277_v19  ;;  %v1214_v57 = vld [vmem:[#allocation7 + $0xb0] sm:$0xf0] }
  0x28   :  { %v1260_v21 = vld [vmem:[#allocation7 + $0x100] sm:$0xf]  ;;  %v1677_v22 = vld [vmem:[#allocation7 + $0x10c] sm:$0xf0]  ;;  %v1133_v31 = vor.u32 %v1645_v18, %v1132_v17  ;;  %884 = vmatpush.bf16.msra.mxu2 %v1405_v20  ;;  %v1695_v61 = vld [vmem:[#allocation7 + $0x1a4] sm:$0xf]  ;;  %v1217_v5 = vor.u32 %v1663_v56, %v1214_v57 }
  0x29   :  { %v1388_v23 = vld [vmem:[#allocation7 + $0x200] sm:$0xf]  ;;  %v1709_v25 = vld [vmem:[#allocation7 + $0x20c] sm:$0xf0]  ;;  %v1261_v35 = vor.u32 %v1677_v22, %v1260_v21  ;;  %897 = vmatpush.bf16.msra.mxu3 %v1533_v24  ;;  %v1342_v62 = vld [vmem:[#allocation7 + $0x1b0] sm:$0xf0] }
  0x2a   :  { %v1516_v26 = vld [vmem:[#allocation7 + $0x300] sm:$0xf]  ;;  %v1741_v27 = vld [vmem:[#allocation7 + $0x30c] sm:$0xf0]  ;;  %v1389_v36 = vor.u32 %v1709_v25, %v1388_v23  ;;  %859 = vmatpush.bf16.msra.mxu0 %v1133_v31  ;;  %v1727_v63 = vld [vmem:[#allocation7 + $0x2a4] sm:$0xf]  ;;  %v1345_v9 = vor.u32 %v1695_v61, %v1342_v62 }
  0x2b   :  { %v1517_v39 = vor.u32 %v1741_v27, %v1516_v26  ;;  %872 = vmatpush.bf16.msra.mxu1 %v1261_v35  ;;  %v51_v53 = vld [vmem:[#allocation4] ss:$8 sm:$0xf]  ;;  %v53_v54 = vld [vmem:[#allocation4 + $0x1] ss:$8 sm:$0xf] }
  0x2c   :  { %885 = vmatpush.bf16.msra.mxu2 %v1389_v36  ;;  %v59_v58 = vmul.f32 %v58_v48, %v51_v53  ;;  %v1470_v1 = vld [vmem:[#allocation7 + $0x2b0] sm:$0xf0]  ;;  %v1759_v2 = vld [vmem:[#allocation7 + $0x3a4] sm:$0xf] }
  0x2d   :  { %898 = vmatpush.bf16.msra.mxu3 %v1517_v39  ;;  %v1598_v3 = vld [vmem:[#allocation7 + $0x3b0] sm:$0xf0]  ;;  %v1659_v6 = vld [vmem:[#allocation7 + $0x84] sm:$0xf]  ;;  %v1473_v10 = vor.u32 %v1727_v63, %v1470_v1 }
  0x2e   :  { %904 = vmatpush.bf16.msrb.mxu0 %v1249_v40  ;;  %v60_v4 = vadd.f32 %v59_v58, %v53_v54  ;;  %v1198_v7 = vld [vmem:[#allocation7 + $0x90] sm:$0xf0]  ;;  %v1601_v11 = vor.u32 %v1759_v2, %v1598_v3  ;;  %v1691_v12 = vld [vmem:[#allocation7 + $0x184] sm:$0xf] }
  0x2f   :  { %917 = vmatpush.bf16.msrb.mxu1 %v1377_v43  ;;  %v1326_v13 = vld [vmem:[#allocation7 + $0x190] sm:$0xf0]  ;;  %v1723_v14 = vld [vmem:[#allocation7 + $0x284] sm:$0xf]  ;;  %v1201_v20 = vor.u32 %v1659_v6, %v1198_v7 }
  0x30   :  { %930 = vmatpush.bf16.msrb.mxu2 %v1505_v44  ;;  %v61_v8 = vmax.f32 %v60_v4, 0.0  ;;  %v1454_v15 = vld [vmem:[#allocation7 + $0x290] sm:$0xf0]  ;;  %v1755_v21 = vld [vmem:[#allocation7 + $0x384] sm:$0xf]  ;;  %v1329_v27 = vor.u32 %v1691_v12, %v1326_v13 }
  0x31   :  { %943 = vmatpush.bf16.msrb.mxu3 %v1633_v49  ;;  %v1582_v22 = vld [vmem:[#allocation7 + $0x390] sm:$0xf0]  ;;  %v1457_v28 = vor.u32 %v1723_v14, %v1454_v15  ;;  %v1655_v29 = vld [vmem:[#allocation7 + $0x64] sm:$0xf]  ;;  %v1380_v12 = vld [vmem:[#allocation7 + $0x1e8] sm:$0xf] }
  0x32   :  { %905 = vmatpush.bf16.msrb.mxu0 %v1233_v55  ;;  %v65_v16 = vperm.slane %v61_v8, 2  ;;  %v63_v17 = vperm.slane %v61_v8, 0  ;;  %v66_v18 = vperm.slane %v61_v8, 3  ;;  %v64_v19 = vperm.slane %v61_v8, 1  ;;  %v1182_v30 = vld [vmem:[#allocation7 + $0x70] sm:$0xf0] }
  0x33   :  { %918 = vmatpush.bf16.msrb.mxu1 %v1361_v59  ;;  %v1687_v31 = vld [vmem:[#allocation7 + $0x164] sm:$0xf]  ;;  %v1585_v32 = vor.u32 %v1755_v21, %v1582_v22  ;;  %v1310_v33 = vld [vmem:[#allocation7 + $0x170] sm:$0xf0]  ;;  %v1185_v38 = vor.u32 %v1655_v29, %v1182_v30  ;;  %v1706_v14 = vld [vmem:[#allocation7 + $0x1f4] sm:$0xf0] }
  0x34   :  { %931 = vmatpush.bf16.msrb.mxu2 %v1489_v60  ;;  %v1897_v23 = vpack.c.bf16 %v65_v16, %v65_v16  ;;  %v1899_v24 = vpack.c.bf16 %v63_v17, %v63_v17  ;;  %v1901_v25 = vpack.c.bf16 %v66_v18, %v66_v18  ;;  %v1903_v26 = vpack.c.bf16 %v64_v19, %v64_v19  ;;  %v1719_v34 = vld [vmem:[#allocation7 + $0x264] sm:$0xf]  ;;  %v1438_v35 = vld [vmem:[#allocation7 + $0x270] sm:$0xf0]  ;;  %v1508_v15 = vld [vmem:[#allocation7 + $0x2e8] sm:$0xf] }
  0x35   :  { %944 = vmatpush.bf16.msrb.mxu3 %v1617_v0  ;;  %v1751_v36 = vld [vmem:[#allocation7 + $0x364] sm:$0xf]  ;;  %v1566_v37 = vld [vmem:[#allocation7 + $0x370] sm:$0xf0]  ;;  %v1313_v39 = vor.u32 %v1687_v31, %v1310_v33  ;;  %v1441_v40 = vor.u32 %v1719_v34, %v1438_v35  ;;  %v1738_v16 = vld [vmem:[#allocation7 + $0x2f4] sm:$0xf0] }
  0x36   :  { %906 = vmatpush.bf16.msrb.mxu0 %v1217_v5  ;;  %886 = vmatmul.bf16.vlgmr.msra.gmra.mxu2 %v1897_v23  ;;  %v1651_v41 = vld [vmem:[#allocation7 + $0x44] sm:$0xf]  ;;  %v1166_v42 = vld [vmem:[#allocation7 + $0x50] sm:$0xf0]  ;;  %v1569_v44 = vor.u32 %v1751_v36, %v1566_v37  ;;  %v1636_v19 = vld [vmem:[#allocation7 + $0x3e8] sm:$0xf] }
  0x37   :  { %919 = vmatpush.bf16.msrb.mxu1 %v1345_v9  ;;  %860 = vmatmul.bf16.vlgmr.msra.gmra.mxu0 %v1899_v24  ;;  %v1683_v43 = vld [vmem:[#allocation7 + $0x144] sm:$0xf]  ;;  %v1294_v45 = vld [vmem:[#allocation7 + $0x150] sm:$0xf0]  ;;  %v1169_v50 = vor.u32 %v1651_v41, %v1166_v42  ;;  %v1236_v29 = vld [vmem:[#allocation7 + $0xc8] sm:$0xf] }
  0x38   :  { %932 = vmatpush.bf16.msrb.mxu2 %v1473_v10  ;;  %899 = vmatmul.bf16.vlgmr.msra.gmra.mxu3 %v1901_v25  ;;  %v1715_v46 = vld [vmem:[#allocation7 + $0x244] sm:$0xf]  ;;  %v1422_v47 = vld [vmem:[#allocation7 + $0x250] sm:$0xf0]  ;;  %v1297_v51 = vor.u32 %v1683_v43, %v1294_v45  ;;  %v1252_v10 = vld [vmem:[#allocation7 + $0xe8] sm:$0xf] }
  0x39   :  { %945 = vmatpush.bf16.msrb.mxu3 %v1601_v11  ;;  %873 = vmatmul.bf16.vlgmr.msra.gmra.mxu1 %v1903_v26  ;;  %v1747_v48 = vld [vmem:[#allocation7 + $0x344] sm:$0xf]  ;;  %v1550_v49 = vld [vmem:[#allocation7 + $0x350] sm:$0xf0]  ;;  %v1425_v52 = vor.u32 %v1715_v46, %v1422_v47  ;;  %v1674_v11 = vld [vmem:[#allocation7 + $0xf4] sm:$0xf0] }
  0x3a   :  { %907 = vmatpush.bf16.msrb.mxu0 %v1201_v20  ;;  %v1647_v53 = vld [vmem:[#allocation7 + $0x24] sm:$0xf]  ;;  %v1150_v54 = vld [vmem:[#allocation7 + $0x30] sm:$0xf0]  ;;  %v1553_v56 = vor.u32 %v1747_v48, %v1550_v49  ;;  %v1770_v20 = vld [vmem:[#allocation7 + $0x3f4] sm:$0xf0]  ;;  %v1253_v22 = vor.u32 %v1674_v11, %v1252_v10 }
  0x3b   :  { %920 = vmatpush.bf16.msrb.mxu1 %v1329_v27  ;;  %v1679_v55 = vld [vmem:[#allocation7 + $0x124] sm:$0xf]  ;;  %v1278_v57 = vld [vmem:[#allocation7 + $0x130] sm:$0xf0]  ;;  %v1153_v62 = vor.u32 %v1647_v53, %v1150_v54  ;;  %v1381_v27 = vor.u32 %v1706_v14, %v1380_v12  ;;  %v1670_v30 = vld [vmem:[#allocation7 + $0xd4] sm:$0xf0] }
  0x3c   :  { %933 = vmatpush.bf16.msrb.mxu2 %v1457_v28  ;;  %v1711_v58 = vld [vmem:[#allocation7 + $0x224] sm:$0xf]  ;;  %v1406_v59 = vld [vmem:[#allocation7 + $0x230] sm:$0xf0]  ;;  %v1281_v1 = vor.u32 %v1679_v55, %v1278_v57  ;;  %v1509_v28 = vor.u32 %v1738_v16, %v1508_v15  ;;  %v1364_v31 = vld [vmem:[#allocation7 + $0x1c8] sm:$0xf] }
  0x3d   :  { %946 = vmatpush.bf16.msrb.mxu3 %v1585_v32  ;;  %v1743_v60 = vld [vmem:[#allocation7 + $0x324] sm:$0xf]  ;;  %v1534_v61 = vld [vmem:[#allocation7 + $0x330] sm:$0xf0]  ;;  %v1409_v2 = vor.u32 %v1711_v58, %v1406_v59  ;;  %v1637_v32 = vor.u32 %v1770_v20, %v1636_v19  ;;  %v1702_v33 = vld [vmem:[#allocation7 + $0x1d4] sm:$0xf0] }
  0x3e   :  { %908 = vmatpush.bf16.msrb.mxu0 %v1185_v38  ;;  %v1643_v63 = vld [vmem:[#allocation7 + $0x4] sm:$0xf]  ;;  %v1134_v0 = vld [vmem:[#allocation7 + $0x10] sm:$0xf0]  ;;  %v1537_v6 = vor.u32 %v1743_v60, %v1534_v61  ;;  %v1492_v34 = vld [vmem:[#allocation7 + $0x2c8] sm:$0xf]  ;;  %v1237_v38 = vor.u32 %v1670_v30, %v1236_v29 }
  0x3f   :  { %921 = vmatpush.bf16.msrb.mxu1 %v1313_v39  ;;  %v1675_v3 = vld [vmem:[#allocation7 + $0x104] sm:$0xf]  ;;  %v1262_v4 = vld [vmem:[#allocation7 + $0x110] sm:$0xf0]  ;;  %v1137_v13 = vor.u32 %v1643_v63, %v1134_v0  ;;  %v1734_v35 = vld [vmem:[#allocation7 + $0x2d4] sm:$0xf0]  ;;  %v1365_v39 = vor.u32 %v1702_v33, %v1364_v31 }
  0x40   :  { %934 = vmatpush.bf16.msrb.mxu2 %v1441_v40  ;;  %v1707_v5 = vld [vmem:[#allocation7 + $0x204] sm:$0xf]  ;;  %v1390_v7 = vld [vmem:[#allocation7 + $0x210] sm:$0xf0]  ;;  %v1265_v17 = vor.u32 %v1675_v3, %v1262_v4  ;;  %v1620_v36 = vld [vmem:[#allocation7 + $0x3c8] sm:$0xf]  ;;  %v1493_v40 = vor.u32 %v1734_v35, %v1492_v34 }
  0x41   :  { %947 = vmatpush.bf16.msrb.mxu3 %v1569_v44  ;;  %v1739_v8 = vld [vmem:[#allocation7 + $0x304] sm:$0xf]  ;;  %v1518_v9 = vld [vmem:[#allocation7 + $0x310] sm:$0xf0]  ;;  %v1393_v18 = vor.u32 %v1707_v5, %v1390_v7  ;;  %v1766_v37 = vld [vmem:[#allocation7 + $0x3d4] sm:$0xf0] }
  0x42   :  { %909 = vmatpush.bf16.msrb.mxu0 %v1169_v50  ;;  %v1521_v21 = vor.u32 %v1739_v8, %v1518_v9  ;;  %v1220_v41 = vld [vmem:[#allocation7 + $0xa8] sm:$0xf]  ;;  %v1666_v42 = vld [vmem:[#allocation7 + $0xb4] sm:$0xf0]  ;;  %v1621_v44 = vor.u32 %v1766_v37, %v1620_v36 }
  0x43   :  { %922 = vmatpush.bf16.msrb.mxu1 %v1297_v51  ;;  %v1348_v43 = vld [vmem:[#allocation7 + $0x1a8] sm:$0xf]  ;;  %v1698_v45 = vld [vmem:[#allocation7 + $0x1b4] sm:$0xf0]  ;;  %v1221_v50 = vor.u32 %v1666_v42, %v1220_v41 }
  0x44   :  { %935 = vmatpush.bf16.msrb.mxu2 %v1425_v52  ;;  %v1476_v46 = vld [vmem:[#allocation7 + $0x2a8] sm:$0xf]  ;;  %v1730_v47 = vld [vmem:[#allocation7 + $0x2b4] sm:$0xf0]  ;;  %v1349_v51 = vor.u32 %v1698_v45, %v1348_v43 }
  0x45   :  { %948 = vmatpush.bf16.msrb.mxu3 %v1553_v56  ;;  %v1604_v48 = vld [vmem:[#allocation7 + $0x3a8] sm:$0xf]  ;;  %v1762_v49 = vld [vmem:[#allocation7 + $0x3b4] sm:$0xf0]  ;;  %v1477_v52 = vor.u32 %v1730_v47, %v1476_v46 }
  0x46   :  { %910 = vmatpush.bf16.msrb.mxu0 %v1153_v62  ;;  %v1204_v53 = vld [vmem:[#allocation7 + $0x88] sm:$0xf]  ;;  %v1662_v54 = vld [vmem:[#allocation7 + $0x94] sm:$0xf0]  ;;  %v1605_v56 = vor.u32 %v1762_v49, %v1604_v48 }
  0x47   :  { %923 = vmatpush.bf16.msrb.mxu1 %v1281_v1  ;;  %v1332_v55 = vld [vmem:[#allocation7 + $0x188] sm:$0xf]  ;;  %v1694_v57 = vld [vmem:[#allocation7 + $0x194] sm:$0xf0]  ;;  %v1205_v62 = vor.u32 %v1662_v54, %v1204_v53  ;;  %v1382_v54 = vld [vmem:[#allocation7 + $0x1f8] sm:$0xf0] }
  0x48   :  { %936 = vmatpush.bf16.msrb.mxu2 %v1409_v2  ;;  %v1460_v58 = vld [vmem:[#allocation7 + $0x288] sm:$0xf]  ;;  %v1726_v59 = vld [vmem:[#allocation7 + $0x294] sm:$0xf0]  ;;  %v1333_v63 = vor.u32 %v1694_v57, %v1332_v55  ;;  %v1736_v55 = vld [vmem:[#allocation7 + $0x2ec] sm:$0xf] }
  0x49   :  { %949 = vmatpush.bf16.msrb.mxu3 %v1537_v6  ;;  %v1588_v60 = vld [vmem:[#allocation7 + $0x388] sm:$0xf]  ;;  %v1758_v61 = vld [vmem:[#allocation7 + $0x394] sm:$0xf0]  ;;  %v1461_v0 = vor.u32 %v1726_v59, %v1460_v58  ;;  %v1768_v59 = vld [vmem:[#allocation7 + $0x3ec] sm:$0xf] }
  0x4a   :  { %911 = vmatpush.bf16.msrb.mxu0 %v1137_v13  ;;  %v1188_v1 = vld [vmem:[#allocation7 + $0x68] sm:$0xf]  ;;  %v1658_v2 = vld [vmem:[#allocation7 + $0x74] sm:$0xf0]  ;;  %v1589_v4 = vor.u32 %v1758_v61, %v1588_v60  ;;  %v1638_v60 = vld [vmem:[#allocation7 + $0x3f8] sm:$0xf0] }
  0x4b   :  { %924 = vmatpush.bf16.msrb.mxu1 %v1265_v17  ;;  %v1316_v3 = vld [vmem:[#allocation7 + $0x168] sm:$0xf]  ;;  %v1690_v5 = vld [vmem:[#allocation7 + $0x174] sm:$0xf0]  ;;  %v1189_v10 = vor.u32 %v1658_v2, %v1188_v1  ;;  %v1668_v1 = vld [vmem:[#allocation7 + $0xcc] sm:$0xf] }
  0x4c   :  { %937 = vmatpush.bf16.msrb.mxu2 %v1393_v18  ;;  %v1444_v6 = vld [vmem:[#allocation7 + $0x268] sm:$0xf]  ;;  %v1722_v7 = vld [vmem:[#allocation7 + $0x274] sm:$0xf0]  ;;  %v1317_v11 = vor.u32 %v1690_v5, %v1316_v3  ;;  %v1238_v2 = vld [vmem:[#allocation7 + $0xd8] sm:$0xf0] }
  0x4d   :  { %950 = vmatpush.bf16.msrb.mxu3 %v1521_v21  ;;  %912 = vmatmul.bf16.vlgmr.msrb.gmra.mxu0 %v1899_v24  ;;  %v1572_v8 = vld [vmem:[#allocation7 + $0x368] sm:$0xf]  ;;  %v1754_v9 = vld [vmem:[#allocation7 + $0x374] sm:$0xf0]  ;;  %v1445_v12 = vor.u32 %v1722_v7, %v1444_v6  ;;  %v1700_v3 = vld [vmem:[#allocation7 + $0x1cc] sm:$0xf] }
  0x4e   :  { %956 = vmatpush.bf16.msra.mxu0 %v1253_v22  ;;  %925 = vmatmul.bf16.vlgmr.msrb.gmra.mxu1 %v1903_v26  ;;  %v1172_v13 = vld [vmem:[#allocation7 + $0x48] sm:$0xf]  ;;  %v1654_v14 = vld [vmem:[#allocation7 + $0x54] sm:$0xf0]  ;;  %v1573_v16 = vor.u32 %v1754_v9, %v1572_v8  ;;  %v1366_v5 = vld [vmem:[#allocation7 + $0x1d8] sm:$0xf0] }
  0x4f   :  { %969 = vmatpush.bf16.msra.mxu1 %v1381_v27  ;;  %938 = vmatmul.bf16.vlgmr.msrb.gmra.mxu2 %v1897_v23  ;;  %v1300_v15 = vld [vmem:[#allocation7 + $0x148] sm:$0xf]  ;;  %v1686_v17 = vld [vmem:[#allocation7 + $0x154] sm:$0xf0]  ;;  %v1173_v22 = vor.u32 %v1654_v14, %v1172_v13  ;;  %v1732_v6 = vld [vmem:[#allocation7 + $0x2cc] sm:$0xf] }
  0x50   :  { %982 = vmatpush.bf16.msra.mxu2 %v1509_v28  ;;  %951 = vmatmul.bf16.vlgmr.msrb.gmra.mxu3 %v1901_v25  ;;  %v1428_v18 = vld [vmem:[#allocation7 + $0x248] sm:$0xf]  ;;  %v1718_v19 = vld [vmem:[#allocation7 + $0x254] sm:$0xf0]  ;;  %v1301_v27 = vor.u32 %v1686_v17, %v1300_v15  ;;  %v1494_v7 = vld [vmem:[#allocation7 + $0x2d8] sm:$0xf0] }
  0x51   :  { %995 = vmatpush.bf16.msra.mxu3 %v1637_v32  ;;  %v1556_v20 = vld [vmem:[#allocation7 + $0x348] sm:$0xf]  ;;  %v1750_v21 = vld [vmem:[#allocation7 + $0x354] sm:$0xf0]  ;;  %v1429_v28 = vor.u32 %v1718_v19, %v1428_v18  ;;  %v1764_v8 = vld [vmem:[#allocation7 + $0x3cc] sm:$0xf] }
  0x52   :  { %957 = vmatpush.bf16.msra.mxu0 %v1237_v38  ;;  %v1156_v29 = vld [vmem:[#allocation7 + $0x28] sm:$0xf]  ;;  %v1650_v30 = vld [vmem:[#allocation7 + $0x34] sm:$0xf0]  ;;  %v1557_v32 = vor.u32 %v1750_v21, %v1556_v20  ;;  %v1622_v9 = vld [vmem:[#allocation7 + $0x3d8] sm:$0xf0] }
  0x53   :  { %970 = vmatpush.bf16.msra.mxu1 %v1365_v39  ;;  %v1284_v31 = vld [vmem:[#allocation7 + $0x128] sm:$0xf]  ;;  %v1682_v33 = vld [vmem:[#allocation7 + $0x134] sm:$0xf0]  ;;  %v1157_v38 = vor.u32 %v1650_v30, %v1156_v29  ;;  %v1664_v13 = vld [vmem:[#allocation7 + $0xac] sm:$0xf] }
  0x54   :  { %983 = vmatpush.bf16.msra.mxu2 %v1493_v40  ;;  %v1412_v34 = vld [vmem:[#allocation7 + $0x228] sm:$0xf]  ;;  %v1714_v35 = vld [vmem:[#allocation7 + $0x234] sm:$0xf0]  ;;  %v1285_v41 = vor.u32 %v1682_v33, %v1284_v31  ;;  %v1222_v14 = vld [vmem:[#allocation7 + $0xb8] sm:$0xf0] }
  0x55   :  { %996 = vmatpush.bf16.msra.mxu3 %v1621_v44  ;;  %v1540_v36 = vld [vmem:[#allocation7 + $0x328] sm:$0xf]  ;;  %v1746_v37 = vld [vmem:[#allocation7 + $0x334] sm:$0xf0]  ;;  %v1413_v42 = vor.u32 %v1714_v35, %v1412_v34  ;;  %v1696_v15 = vld [vmem:[#allocation7 + $0x1ac] sm:$0xf] }
  0x56   :  { %958 = vmatpush.bf16.msra.mxu0 %v1221_v50  ;;  %v1140_v39 = vld [vmem:[#allocation7 + $0x8] sm:$0xf]  ;;  %v1646_v40 = vld [vmem:[#allocation7 + $0x14] sm:$0xf0]  ;;  %v1541_v46 = vor.u32 %v1746_v37, %v1540_v36  ;;  %v1672_v50 = vld [vmem:[#allocation7 + $0xec] sm:$0xf] }
  0x57   :  { %971 = vmatpush.bf16.msra.mxu1 %v1349_v51  ;;  %v1268_v43 = vld [vmem:[#allocation7 + $0x108] sm:$0xf]  ;;  %v1678_v44 = vld [vmem:[#allocation7 + $0x114] sm:$0xf0]  ;;  %v1254_v51 = vld [vmem:[#allocation7 + $0xf8] sm:$0xf0]  ;;  %v1141_v53 = vor.u32 %v1646_v40, %v1140_v39 }
  0x58   :  { %984 = vmatpush.bf16.msra.mxu2 %v1477_v52  ;;  %v1396_v45 = vld [vmem:[#allocation7 + $0x208] sm:$0xf]  ;;  %v1710_v47 = vld [vmem:[#allocation7 + $0x214] sm:$0xf0]  ;;  %v1704_v52 = vld [vmem:[#allocation7 + $0x1ec] sm:$0xf]  ;;  %v1269_v57 = vor.u32 %v1678_v44, %v1268_v43 }
  0x59   :  { %997 = vmatpush.bf16.msra.mxu3 %v1605_v56  ;;  %v1524_v48 = vld [vmem:[#allocation7 + $0x308] sm:$0xf]  ;;  %v1742_v49 = vld [vmem:[#allocation7 + $0x314] sm:$0xf0]  ;;  %v1510_v56 = vld [vmem:[#allocation7 + $0x2f8] sm:$0xf0]  ;;  %v1397_v58 = vor.u32 %v1710_v47, %v1396_v45 }
  0x5a   :  { %959 = vmatpush.bf16.msra.mxu0 %v1205_v62  ;;  %v1525_v61 = vor.u32 %v1742_v49, %v1524_v48  ;;  %v1257_v62 = vor.u32 %v1672_v50, %v1254_v51  ;;  %v1350_v17 = vld [vmem:[#allocation7 + $0x1b8] sm:$0xf0]  ;;  %v1728_v18 = vld [vmem:[#allocation7 + $0x2ac] sm:$0xf] }
  0x5b   :  { %972 = vmatpush.bf16.msra.mxu1 %v1333_v63  ;;  %v1385_v63 = vor.u32 %v1704_v52, %v1382_v54  ;;  %v1478_v19 = vld [vmem:[#allocation7 + $0x2b8] sm:$0xf0]  ;;  %v1760_v20 = vld [vmem:[#allocation7 + $0x3ac] sm:$0xf] }
  0x5c   :  { %985 = vmatpush.bf16.msra.mxu2 %v1461_v0  ;;  %v1513_v0 = vor.u32 %v1736_v55, %v1510_v56  ;;  %v1606_v21 = vld [vmem:[#allocation7 + $0x3b8] sm:$0xf0]  ;;  %v1660_v29 = vld [vmem:[#allocation7 + $0x8c] sm:$0xf] }
  0x5d   :  { %998 = vmatpush.bf16.msra.mxu3 %v1589_v4  ;;  %v1641_v4 = vor.u32 %v1768_v59, %v1638_v60  ;;  %v1206_v30 = vld [vmem:[#allocation7 + $0x98] sm:$0xf0]  ;;  %v1692_v31 = vld [vmem:[#allocation7 + $0x18c] sm:$0xf] }
  0x5e   :  { %960 = vmatpush.bf16.msra.mxu0 %v1189_v10  ;;  %v1241_v10 = vor.u32 %v1668_v1, %v1238_v2  ;;  %v1334_v33 = vld [vmem:[#allocation7 + $0x198] sm:$0xf0]  ;;  %v1724_v34 = vld [vmem:[#allocation7 + $0x28c] sm:$0xf] }
  0x5f   :  { %973 = vmatpush.bf16.msra.mxu1 %v1317_v11  ;;  %v1369_v11 = vor.u32 %v1700_v3, %v1366_v5  ;;  %v1462_v35 = vld [vmem:[#allocation7 + $0x298] sm:$0xf0]  ;;  %v1756_v36 = vld [vmem:[#allocation7 + $0x38c] sm:$0xf]  ;;  %v1337_v39 = vor.u32 %v1692_v31, %v1334_v33 }
  0x60   :  { %986 = vmatpush.bf16.msra.mxu2 %v1445_v12  ;;  %v1497_v12 = vor.u32 %v1732_v6, %v1494_v7  ;;  %v1590_v37 = vld [vmem:[#allocation7 + $0x398] sm:$0xf0]  ;;  %v1465_v40 = vor.u32 %v1724_v34, %v1462_v35  ;;  %v1688_v43 = vld [vmem:[#allocation7 + $0x16c] sm:$0xf] }
  0x61   :  { %999 = vmatpush.bf16.msra.mxu3 %v1573_v16  ;;  %v1625_v16 = vor.u32 %v1764_v8, %v1622_v9  ;;  %v1593_v44 = vor.u32 %v1756_v36, %v1590_v37  ;;  %v1318_v45 = vld [vmem:[#allocation7 + $0x178] sm:$0xf0]  ;;  %v1752_v48 = vld [vmem:[#allocation7 + $0x36c] sm:$0xf] }
  0x62   :  { %961 = vmatpush.bf16.msra.mxu0 %v1173_v22  ;;  %v1225_v22 = vor.u32 %v1664_v13, %v1222_v14  ;;  %v1446_v47 = vld [vmem:[#allocation7 + $0x278] sm:$0xf0]  ;;  %v1321_v51 = vor.u32 %v1688_v43, %v1318_v45  ;;  %v1684_v55 = vld [vmem:[#allocation7 + $0x14c] sm:$0xf] }
  0x63   :  { %974 = vmatpush.bf16.msra.mxu1 %v1301_v27  ;;  %v1353_v27 = vor.u32 %v1696_v15, %v1350_v17  ;;  %v1574_v49 = vld [vmem:[#allocation7 + $0x378] sm:$0xf0]  ;;  %v1748_v60 = vld [vmem:[#allocation7 + $0x34c] sm:$0xf] }
  0x64   :  { %987 = vmatpush.bf16.msra.mxu2 %v1429_v28  ;;  %v1481_v28 = vor.u32 %v1728_v18, %v1478_v19  ;;  %v1174_v54 = vld [vmem:[#allocation7 + $0x58] sm:$0xf0]  ;;  %v1577_v56 = vor.u32 %v1752_v48, %v1574_v49  ;;  %v1648_v1 = vld [vmem:[#allocation7 + $0x2c] sm:$0xf] }
  0x65   :  { %1000 = vmatpush.bf16.msra.mxu3 %v1557_v32  ;;  %v1609_v32 = vor.u32 %v1760_v20, %v1606_v21  ;;  %v1430_v59 = vld [vmem:[#allocation7 + $0x258] sm:$0xf0]  ;;  %v1680_v3 = vld [vmem:[#allocation7 + $0x12c] sm:$0xf] }
  0x66   :  { %962 = vmatpush.bf16.msra.mxu0 %v1157_v38  ;;  %v1209_v38 = vor.u32 %v1660_v29, %v1206_v30  ;;  %v1158_v2 = vld [vmem:[#allocation7 + $0x38] sm:$0xf0]  ;;  %v1712_v6 = vld [vmem:[#allocation7 + $0x22c] sm:$0xf] }
  0x67   :  { %975 = vmatpush.bf16.msra.mxu1 %v1285_v41  ;;  %v1656_v41 = vld [vmem:[#allocation7 + $0x6c] sm:$0xf]  ;;  %v1286_v5 = vld [vmem:[#allocation7 + $0x138] sm:$0xf0] }
  0x68   :  { %988 = vmatpush.bf16.msra.mxu2 %v1413_v42  ;;  %v1190_v42 = vld [vmem:[#allocation7 + $0x78] sm:$0xf0]  ;;  %v1744_v8 = vld [vmem:[#allocation7 + $0x32c] sm:$0xf] }
  0x69   :  { %1001 = vmatpush.bf16.msra.mxu3 %v1541_v46  ;;  %v1720_v46 = vld [vmem:[#allocation7 + $0x26c] sm:$0xf]  ;;  %v1193_v50 = vor.u32 %v1656_v41, %v1190_v42  ;;  %v1414_v7 = vld [vmem:[#allocation7 + $0x238] sm:$0xf0] }
  0x6a   :  { %963 = vmatpush.bf16.msra.mxu0 %v1141_v53  ;;  %v1449_v52 = vor.u32 %v1720_v46, %v1446_v47  ;;  %v1652_v53 = vld [vmem:[#allocation7 + $0x4c] sm:$0xf]  ;;  %v1542_v9 = vld [vmem:[#allocation7 + $0x338] sm:$0xf0] }
  0x6b   :  { %976 = vmatpush.bf16.msra.mxu1 %v1269_v57  ;;  %v1302_v57 = vld [vmem:[#allocation7 + $0x158] sm:$0xf0]  ;;  %v1644_v13 = vld [vmem:[#allocation7 + $0xc] sm:$0xf] }
  0x6c   :  { %989 = vmatpush.bf16.msra.mxu2 %v1397_v58  ;;  %v1716_v58 = vld [vmem:[#allocation7 + $0x24c] sm:$0xf]  ;;  %v1142_v14 = vld [vmem:[#allocation7 + $0x18] sm:$0xf0] }
  0x6d   :  { %1002 = vmatpush.bf16.msra.mxu3 %v1525_v61  ;;  %964 = vmatmul.bf16.vlgmr.msra.gmra.mxu0 %v1899_v24  ;;  %v1558_v61 = vld [vmem:[#allocation7 + $0x358] sm:$0xf0]  ;;  %v1676_v15 = vld [vmem:[#allocation7 + $0x10c] sm:$0xf] }
  0x6e   :  { %1008 = vmatpush.bf16.msrb.mxu0 %v1257_v62  ;;  %977 = vmatmul.bf16.vlgmr.msra.gmra.mxu1 %v1903_v26  ;;  %v1177_v62 = vor.u32 %v1652_v53, %v1174_v54  ;;  %v1270_v17 = vld [vmem:[#allocation7 + $0x118] sm:$0xf0]  ;;  %v1708_v18 = vld [vmem:[#allocation7 + $0x20c] sm:$0xf] }
  0x6f   :  { %1021 = vmatpush.bf16.msrb.mxu1 %v1385_v63  ;;  %990 = vmatmul.bf16.vlgmr.msra.gmra.mxu2 %v1897_v23  ;;  %v1305_v63 = vor.u32 %v1684_v55, %v1302_v57  ;;  %v1398_v19 = vld [vmem:[#allocation7 + $0x218] sm:$0xf0]  ;;  %v1740_v20 = vld [vmem:[#allocation7 + $0x30c] sm:$0xf] }
  0x70   :  { %1034 = vmatpush.bf16.msrb.mxu2 %v1513_v0  ;;  %1003 = vmatmul.bf16.vlgmr.msra.gmra.mxu3 %v1901_v25  ;;  %v1433_v0 = vor.u32 %v1716_v58, %v1430_v59  ;;  %v1526_v21 = vld [vmem:[#allocation7 + $0x318] sm:$0xf0]  ;;  %v55_v30 = vld [vmem:[#allocation4 + $0x2] ss:$8 sm:$0xf] }
  0x71   :  { %1047 = vmatpush.bf16.msrb.mxu3 %v1641_v4  ;;  %v1561_v4 = vor.u32 %v1748_v60, %v1558_v61  ;;  %v1529_v29 = vor.u32 %v1740_v20, %v1526_v21  ;;  %v844_v31 = vperm.slane %v55_v30, 0  ;;  %v845_v54 = vperm.slane %v55_v30, 1 }
  0x72   :  { %1009 = vmatpush.bf16.msrb.mxu0 %v1241_v10  ;;  %v1161_v10 = vor.u32 %v1648_v1, %v1158_v2  ;;  %v846_v55 = vperm.slane %v55_v30, 2  ;;  %v57_v2 = vld [vmem:[#allocation4 + $0x3] ss:$8 sm:$0xf] }
  0x73   :  { %1022 = vmatpush.bf16.msrb.mxu1 %v1369_v11  ;;  %v1289_v11 = vor.u32 %v1680_v3, %v1286_v5 }
  0x74   :  { %1035 = vmatpush.bf16.msrb.mxu2 %v1497_v12  ;;  %v1417_v12 = vor.u32 %v1712_v6, %v1414_v7 }
  0x75   :  { %1048 = vmatpush.bf16.msrb.mxu3 %v1625_v16  ;;  %v1545_v16 = vor.u32 %v1744_v8, %v1542_v9  ;;  %v1066_v8 = vperm.slane %v57_v2, 1  ;;  %v1065_v9 = vperm.slane %v57_v2, 0 }
  0x76   :  { %1010 = vmatpush.bf16.msrb.mxu0 %v1225_v22  ;;  %v1145_v22 = vor.u32 %v1644_v13, %v1142_v14 }
  0x77   :  { %1023 = vmatpush.bf16.msrb.mxu1 %v1353_v27  ;;  %v1273_v27 = vor.u32 %v1676_v15, %v1270_v17 }
  0x78   :  { %1036 = vmatpush.bf16.msrb.mxu2 %v1481_v28  ;;  %v1401_v28 = vor.u32 %v1708_v18, %v1398_v19 }
  0x79   :  { %1049 = vmatpush.bf16.msrb.mxu3 %v1609_v32 }
  0x7a   :  { %1011 = vmatpush.bf16.msrb.mxu0 %v1209_v38 }
  0x7b   :  { %1024 = vmatpush.bf16.msrb.mxu1 %v1337_v39 }
  0x7c   :  { %1037 = vmatpush.bf16.msrb.mxu2 %v1465_v40 }
  0x7d   :  { %1050 = vmatpush.bf16.msrb.mxu3 %v1593_v44 }
  0x7e   :  { %1012 = vmatpush.bf16.msrb.mxu0 %v1193_v50 }
  0x7f   :  { %1025 = vmatpush.bf16.msrb.mxu1 %v1321_v51 }
  0x80   :  { %1038 = vmatpush.bf16.msrb.mxu2 %v1449_v52 }
  0x81   :  { %1051 = vmatpush.bf16.msrb.mxu3 %v1577_v56 }
  0x82   :  { %1013 = vmatpush.bf16.msrb.mxu0 %v1177_v62 }
  0x83   :  { %1026 = vmatpush.bf16.msrb.mxu1 %v1305_v63 }
  0x84   :  { %1039 = vmatpush.bf16.msrb.mxu2 %v1433_v0  ;;  %v847_v0 = vperm.slane %v55_v30, 3 }
  0x85   :  { %1052 = vmatpush.bf16.msrb.mxu3 %v1561_v4 }
  0x86   :  { %1014 = vmatpush.bf16.msrb.mxu0 %v1161_v10 }
  0x87   :  { %1027 = vmatpush.bf16.msrb.mxu1 %v1289_v11 }
  0x88   :  { %1040 = vmatpush.bf16.msrb.mxu2 %v1417_v12  ;;  %v1067_v12 = vperm.slane %v57_v2, 2 }
  0x89   :  { %1053 = vmatpush.bf16.msrb.mxu3 %v1545_v16 }
  0x8a   :  { %1015 = vmatpush.bf16.msrb.mxu0 %v1145_v22 }
  0x8b   :  { %1028 = vmatpush.bf16.msrb.mxu1 %v1273_v27  ;;  %v1068_v27 = vperm.slane %v57_v2, 3 }
  0x8c   :  { %1041 = vmatpush.bf16.msrb.mxu2 %v1401_v28 }
  0x8d   :  { %1054 = vmatpush.bf16.msrb.mxu3 %v1529_v29  ;;  %1016 = vmatmul.bf16.vlgmr.msrb.gmra.mxu0 %v1899_v24 }
  0x8e   :  { %1029 = vmatmul.bf16.vlgmr.msrb.gmra.mxu1 %v1903_v26 }
  0x8f   :  { %1042 = vmatmul.bf16.vlgmr.msrb.gmra.mxu2 %v1897_v23 }
  0x90   :  { %1055 = vmatmul.bf16.vlgmr.msrb.gmra.mxu3 %v1901_v25 }
  0xb4   :  { %v861_v32 = vpop.f32.mrf.mxu0 }
  0xb5   :  { %v862_v33 = vadd.f32 %v861_v32, %v844_v31 }
  0xb6   :  { %v874_v34 = vpop.f32.mrf.mxu1 }
  0xb7   :  { %v875_v35 = vadd.f32 %v874_v34, %v862_v33 }
  0xb9   :  { %v887_v36 = vpop.f32.mrf.mxu2 }
  0xba   :  { %v888_v37 = vadd.f32 %v887_v36, %v875_v35 }
  0xbb   :  { %v900_v38 = vpop.f32.mrf.mxu3 }
  0xbc   :  { %v901_v39 = vadd.f32 %v900_v38, %v888_v37  ;;  %v863_v40 = vpop.f32.mrf.mxu0 }
  0xbe   :  { %v876_v41 = vpop.f32.mrf.mxu1  ;;  %v1060_v10 = vmax.f32 %v901_v39, 0.0  ;;  %v1088_v39 = vstv %s1928_s1  ;;  %s1117_s1 = sshll.u32 %s1862_s28, 4  ;;  %s1118_s1 = int_to_ptr.vmem [resolvable:$true] %s1117_s1 }
  0xc0   :  { %v1073_v16 = vmul.f32 %v1065_v9, %v1060_v10 }
  0xc1   :  { %v889_v42 = vpop.f32.mrf.mxu2 }
  0xc2   :  { %v1078_v30 = vsel %vm1077_vm0, %v1073_v16, 0.0 }
  0xc3   :  { %v902_v24 = vpop.f32.mrf.mxu3 }
  0xca   :  { %v913_v43 = vpop.f32.mrf.mxu0 }
  0xcb   :  { %v926_v26 = vpop.f32.mrf.mxu1  ;;  %v914_v57 = vadd.f32 %v913_v43, %v845_v54 }
  0xcd   :  { %v927_v60 = vadd.f32 %v926_v26, %v914_v57 }
  0xd2   :  { %v939_v44 = vpop.f32.mrf.mxu2  ;;  %v915_v45 = vpop.f32.mrf.mxu0 }
  0xd3   :  { %v952_v23 = vpop.f32.mrf.mxu3  ;;  %v928_v25 = vpop.f32.mrf.mxu1  ;;  %v940_v62 = vadd.f32 %v939_v44, %v927_v60 }
  0xd5   :  { %v953_v1 = vadd.f32 %v952_v23, %v940_v62 }
  0xd7   :  { %v1061_v7 = vmax.f32 %v953_v1, 0.0 }
  0xd9   :  { %v1074_v14 = vmul.f32 %v1066_v8, %v1061_v7 }
  0xda   :  { %v941_v46 = vpop.f32.mrf.mxu2 }
  0xdb   :  { %v954_v47 = vpop.f32.mrf.mxu3  ;;  %v1079_v28 = vsel %vm1077_vm0, %v1074_v14, 0.0 }
  0xdc   :  { %v1080_v32 = vadd.f32 %v1079_v28, %v1078_v30 }
  0xea   :  { %v965_v48 = vpop.f32.mrf.mxu0 }
  0xeb   :  { %v978_v49 = vpop.f32.mrf.mxu1  ;;  %v966_v59 = vadd.f32 %v965_v48, %v846_v55 }
  0xed   :  { %v979_v61 = vadd.f32 %v978_v49, %v966_v59 }
  0xf2   :  { %v991_v50 = vpop.f32.mrf.mxu2  ;;  %v967_v52 = vpop.f32.mrf.mxu0 }
  0xf3   :  { %v1004_v51 = vpop.f32.mrf.mxu3  ;;  %v980_v53 = vpop.f32.mrf.mxu1  ;;  %v992_v63 = vadd.f32 %v991_v50, %v979_v61 }
  0xf5   :  { %v1005_v3 = vadd.f32 %v1004_v51, %v992_v63 }
  0xf7   :  { %v1062_v11 = vmax.f32 %v1005_v3, 0.0 }
  0xf9   :  { %v1075_v17 = vmul.f32 %v1067_v12, %v1062_v11 }
  0xfa   :  { %v993_v56 = vpop.f32.mrf.mxu2 }
  0xfb   :  { %v1006_v58 = vpop.f32.mrf.mxu3  ;;  %v1081_v31 = vsel %vm1077_vm0, %v1075_v17, 0.0 }
  0xfc   :  { %v1082_v35 = vadd.f32 %v1081_v31, %v1080_v32 }
 0x10a   :  { %v1017_v4 = vpop.f32.mrf.mxu0 }
 0x10b   :  { %v1018_v5 = vadd.f32 %v1017_v4, %v847_v0  ;;  %v1030_v6 = vpop.f32.mrf.mxu1 }
 0x10d   :  { %v1031_v13 = vadd.f32 %v1030_v6, %v1018_v5 }
 0x112   :  { %v1043_v15 = vpop.f32.mrf.mxu2  ;;  %v1019_v20 = vpop.f32.mrf.mxu0 }
 0x113   :  { %v1044_v18 = vadd.f32 %v1043_v15, %v1031_v13  ;;  %v1056_v19 = vpop.f32.mrf.mxu3  ;;  %v1032_v21 = vpop.f32.mrf.mxu1 }
 0x115   :  { %v1057_v22 = vadd.f32 %v1056_v19, %v1044_v18 }
 0x117   :  { %v1063_v29 = vmax.f32 %v1057_v22, 0.0 }
 0x119   :  { %v1076_v33 = vmul.f32 %v1068_v27, %v1063_v29 }
 0x11a   :  { %v1045_v34 = vpop.f32.mrf.mxu2 }
 0x11b   :  { %v1058_v36 = vpop.f32.mrf.mxu3  ;;  %v1083_v37 = vsel %vm1077_vm0, %v1076_v33, 0.0 }
 0x11c   :  { %v1084_v38 = vadd.f32 %v1083_v37, %v1082_v35 }
 0x11e   :  { %1085 = vadd.xlane.f32.xlu0 %v1084_v38 }
 0x191   :  { %v1086_v40 = vpop.xlane.xlu0 %1085 }
 0x192   :  { %v1089_v41 = vadd.f32 %v1088_v39, %v1086_v40 }
 0x194   :  { %v1642_v42 = vmul.f32 -1.442695, %v1089_v41 }
 0x196   :  { %1776 = vpow2.f32 %v1642_v42 }
 0x19c   :  { %v1777_v24 = vpop.eup %1776 }
 0x19d   :  { %v1093_v43 = vadd.f32 1.0, %v1777_v24 }
 0x19f   :  { %1778 = vrcp.f32 %v1093_v43  ;;  %v1105_v45 = vand.u32 2147483648, %v1093_v43  ;;  %v1103_v46 = vand.u32 2147483647, %v1093_v43  ;;  %vm1099_vm2 = vweird.f32 %v1093_v43 }
 0x1a1   :  { %v1106_v48 = vor.u32 1.1754944e-38, %v1105_v45  ;;  %vm1104_vm4 = vcmp.eq.f32.partialorder %v1103_v46, 8.507059e+37 }
 0x1a5   :  { %v1779_v26 = vpop.eup %1778 }
 0x1a6   :  { %v1095_v44 = vmul.f32 %v1779_v26, %v1093_v43  ;;  %vm1100_vm1 = vweird.f32 %v1779_v26 }
 0x1a7   :  { %vm1101_vm3 = vmor %vm1099_vm2, %vm1100_vm1 }
 0x1a8   :  { %v1096_v23 = vsub.f32 1.0, %v1095_v44 }
 0x1aa   :  { %v1097_v25 = vmul.f32 %v1779_v26, %v1096_v23 }
 0x1ac   :  { %v1098_v47 = vadd.f32 %v1779_v26, %v1097_v25 }
 0x1ae   :  { %v1102_v49 = vsel %vm1101_vm3, %v1779_v26, %v1098_v47 }
 0x1af   :  { %v1107_v50 = vsel %vm1104_vm4, %v1106_v48, %v1102_v49 }
 0x1b0   :  { %v1109_v51 = vmul.f32 10.0, %v1107_v50 }
 0x1b2   :  { %1111 = vst.msk [vmem:[#allocation9] sm:$0x1] %vm1110_vm5, %v1109_v51 }
 0x1b3   :  { %1122 = dma.vmem_to_hbm [thread:$0]  %s1118_s1, 16, %s1120_s5, [#allocation6]  }
 0x1b4   :  { %1856 = dma.done.wait [#allocation6], 16  }
 0x1b5   :  { %1857 = vsyncadd [#allocation6], 4294967280 }
 0x1b6   :  { %1127 = vsyncpa [#allocation5], 1 }
 0x1b7   :  { %1128 = vsyncpa [#allocation8], 1 }
 0x1b8   :  { %1129 = vsyncpa [#allocation6], 1 }

</bundles_post_ra>
